<compile_context>
chip_gen: v5e
topology: v5e:2x2
jax: 0.10.0
libtpu: 0.0.40
codegen_flags: <defaults>
</compile_context>

<pallas_src>
import functools

import jax
import jax.numpy as jnp
from jax.experimental import pallas as pl
from jax.experimental.pallas import tpu as pltpu


# ----------------------------------------------------------------------------
# Model definition (shapes from the PyTorch module)
# ----------------------------------------------------------------------------
LAYER_DIMS = [784, 128, 64, 12, 2, 12, 64, 128, 784]
# activation applied AFTER each linear layer: 'relu', 'tanh' or None
ACTS = ["relu", "relu", "relu", None, "relu", "relu", "relu", "tanh"]

LANE = 128
SUBLANE = 8


def _round_up(x, m):
    return ((x + m - 1) // m) * m


# First / last dims are kept at the native 784 (block dim == array dim is a
# legal TPU BlockSpec, so no wrapper-side pad/slice of the big activations).
# Inner dims are padded to 128 (applied to the tiny weights only).
PADDED_DIMS = (
    [LAYER_DIMS[0]]
    + [_round_up(d, LANE) for d in LAYER_DIMS[1:-1]]
    + [LAYER_DIMS[-1]]
)


def _choose_tb(batch):
    """Pick the batch tile: big enough to fill MXU rows / amortize grid
    overhead, small enough for VMEM, and >=2 grid steps for v7x megacore."""
    b = _round_up(batch, SUBLANE)
    if b >= 1024:
        return 512                      # large: 512-row tiles, many grid steps
    if b >= 64:
        return _round_up((b + 1) // 2, SUBLANE)  # medium: 2 tiles -> 2 TCs busy
    return b                            # tiny (e.g. demo batch): single tile


# ----------------------------------------------------------------------------
# Pallas kernel: full MLP chain for one batch tile
# ----------------------------------------------------------------------------
def mlp_kernel(x_ref, *rest):
    """rest = (w0, b0, w1, b1, ..., w7, b7, o_ref)."""
    o_ref = rest[-1]
    params = rest[:-1]
    n_layers = len(params) // 2

    h = x_ref[...]  # (tb, 784) f32
    for li in range(n_layers):
        w = params[2 * li][...]        # bf16 (din_p, dout_p)
        b = params[2 * li + 1][...]    # f32  (1, dout_p)
        # bf16 x bf16 MXU matmul with f32 accumulation; bias/act in f32.
        h = jnp.dot(h.astype(w.dtype), w, preferred_element_type=jnp.float32) + b
        act = ACTS[li]
        if act == "relu":
            h = jnp.maximum(h, 0.0)
        elif act == "tanh":
            h = jnp.tanh(h)
    o_ref[...] = h.astype(o_ref.dtype)


# ----------------------------------------------------------------------------
# One-time parameter preparation (hoisted out of the forward path):
# zero-pad inner dims to 128 and cast weights to bf16 (biases stay f32).
# ----------------------------------------------------------------------------
def prepare_params(weights, biases):
    padded = []
    for i, (w, b) in enumerate(zip(weights, biases)):
        din, dout = LAYER_DIMS[i], LAYER_DIMS[i + 1]
        din_p, dout_p = PADDED_DIMS[i], PADDED_DIMS[i + 1]
        w_bf16 = w.astype(jnp.bfloat16)
        if (din_p, dout_p) != (din, dout):
            w_p = jnp.zeros((din_p, dout_p), jnp.bfloat16).at[:din, :dout].set(w_bf16)
        else:
            w_p = w_bf16
        if dout_p != dout:
            b_p = jnp.zeros((1, dout_p), jnp.float32).at[0, :dout].set(b)
        else:
            b_p = b.reshape(1, dout).astype(jnp.float32)
        padded.append(w_p)
        padded.append(b_p)
    return tuple(padded)


# ----------------------------------------------------------------------------
# JAX wrapper: pallas_call with batch-tiled grid
# ----------------------------------------------------------------------------
@jax.jit
def autoencoder_forward(x, padded_params):
    """x: (B, 784) f32. padded_params: output of prepare_params()."""
    B, D_in = x.shape
    assert D_in == LAYER_DIMS[0]
    D_out = LAYER_DIMS[-1]
    n_layers = len(LAYER_DIMS) - 1

    tb = _choose_tb(B)
    B_pad = _round_up(B, tb)
    if B_pad != B:  # pad only batch rows (never the 784 feature dim)
        x = jnp.pad(x, ((0, B_pad - B), (0, 0)))

    # BlockSpecs: batch tiled along grid axis 0, params replicated per tile
    # (constant block index -> fetched once by the pipeline).
    in_specs = [pl.BlockSpec((tb, D_in), lambda i: (i, 0))]
    for li in range(n_layers):
        din_p, dout_p = PADDED_DIMS[li], PADDED_DIMS[li + 1]
        in_specs.append(pl.BlockSpec((din_p, dout_p), lambda i: (0, 0)))
        in_specs.append(pl.BlockSpec((1, dout_p), lambda i: (0, 0)))

    out_spec = pl.BlockSpec((tb, D_out), lambda i: (i, 0))

    out = pl.pallas_call(
        mlp_kernel,
        out_shape=jax.ShapeDtypeStruct((B_pad, D_out), jnp.float32),
        grid_spec=pltpu.PrefetchScalarGridSpec(
            num_scalar_prefetch=0,
            grid=(B_pad // tb,),
            in_specs=in_specs,
            out_specs=out_spec,
        ),
        compiler_params=pltpu.CompilerParams(
            dimension_semantics=("parallel",),
        ),
    )(x, *padded_params)

    if B_pad != B:
        out = out[:B]
    return out


# ----------------------------------------------------------------------------
# Deterministic parameter init (PyTorch-style U(-1/sqrt(fan_in), 1/sqrt(fan_in)))
# ----------------------------------------------------------------------------
def init_params(key):
    weights, biases = [], []
    for i in range(len(LAYER_DIMS) - 1):
        din, dout = LAYER_DIMS[i], LAYER_DIMS[i + 1]
        key, kw, kb = jax.random.split(key, 3)
        bound = 1.0 / jnp.sqrt(din)
        # stored as (Din, Dout) so forward is x @ W + b (== x @ W_torch.T + b)
        w = jax.random.uniform(kw, (din, dout), jnp.float32, -bound, bound)
        b = jax.random.uniform(kb, (dout,), jnp.float32, -bound, bound)
        weights.append(w)
        biases.append(b)
    return weights, biases


def _apply_act(h, li):
    if ACTS[li] == "relu":
        return jnp.maximum(h, 0.0)
    if ACTS[li] == "tanh":
        return jnp.tanh(h)
    return h


def reference_forward_f32(x, weights, biases):
    h = x
    for li, (w, b) in enumerate(zip(weights, biases)):
        h = _apply_act(h @ w + b, li)
    return h


def reference_forward_bf16(x, weights, biases):
    """Mirrors the kernel's precision: bf16 operands, f32 accumulation."""
    h = x
    for li, (w, b) in enumerate(zip(weights, biases)):
        h = jnp.dot(
            h.astype(jnp.bfloat16),
            w.astype(jnp.bfloat16),
            preferred_element_type=jnp.float32,
        ) + b
        h = _apply_act(h, li)
    return h


if __name__ == "__main__":
    key = jax.random.PRNGKey(0)
    k_in, k_param = jax.random.split(key)

    B = 2
    x = jax.random.normal(k_in, (B, 28 * 28), jnp.float32)
    weights, biases = init_params(k_param)

    padded_params = prepare_params(weights, biases)  # one-time, outside forward

    out = autoencoder_forward(x, padded_params)
    out = jax.block_until_ready(out)

    ref_match = reference_forward_bf16(x, weights, biases)  # precision-matched
    ref_f32 = reference_forward_f32(x, weights, biases)     # pure f32 semantics

    assert out.shape == (B, 28 * 28), out.shape
    assert jnp.allclose(out, ref_match, atol=2e-3, rtol=2e-3), (
        float(jnp.max(jnp.abs(out - ref_match)))
    )
    assert jnp.allclose(out, ref_f32, atol=5e-2, rtol=5e-2), (
        float(jnp.max(jnp.abs(out - ref_f32)))
    )

    print("KERNEL_OK")
</pallas_src>

<mosaic_0001>
module attributes {stable_mosaic.version = 11 : i64} {
  func.func @mlp_kernel(%arg0: i32, %arg1: memref<8x784xf32, #tpu.memory_space<vmem>>, %arg2: memref<784x128xbf16, #tpu.memory_space<vmem>>, %arg3: memref<1x128xf32, #tpu.memory_space<vmem>>, %arg4: memref<128x128xbf16, #tpu.memory_space<vmem>>, %arg5: memref<1x128xf32, #tpu.memory_space<vmem>>, %arg6: memref<128x128xbf16, #tpu.memory_space<vmem>>, %arg7: memref<1x128xf32, #tpu.memory_space<vmem>>, %arg8: memref<128x128xbf16, #tpu.memory_space<vmem>>, %arg9: memref<1x128xf32, #tpu.memory_space<vmem>>, %arg10: memref<128x128xbf16, #tpu.memory_space<vmem>>, %arg11: memref<1x128xf32, #tpu.memory_space<vmem>>, %arg12: memref<128x128xbf16, #tpu.memory_space<vmem>>, %arg13: memref<1x128xf32, #tpu.memory_space<vmem>>, %arg14: memref<128x128xbf16, #tpu.memory_space<vmem>>, %arg15: memref<1x128xf32, #tpu.memory_space<vmem>>, %arg16: memref<128x784xbf16, #tpu.memory_space<vmem>>, %arg17: memref<1x784xf32, #tpu.memory_space<vmem>>, %arg18: memref<8x784xf32, #tpu.memory_space<vmem>>) attributes {dimension_semantics = [#tpu.dimension_semantics<parallel>], iteration_bounds = array<i64: 1>, scalar_prefetch = 0 : i64, scratch_operands = 0 : i64, tpu.core_type = #tpu.core_type<tc>, window_params = [{transform_indices = @transform_0, window_bounds = array<i64: 8, 784>}, {pipeline_mode = #tpu.pipeline_mode<synchronous>, transform_indices = @transform_1, window_bounds = array<i64: 784, 128>}, {pipeline_mode = #tpu.pipeline_mode<synchronous>, transform_indices = @transform_2, window_bounds = array<i64: 1, 128>}, {pipeline_mode = #tpu.pipeline_mode<synchronous>, transform_indices = @transform_3, window_bounds = array<i64: 128, 128>}, {pipeline_mode = #tpu.pipeline_mode<synchronous>, transform_indices = @transform_4, window_bounds = array<i64: 1, 128>}, {pipeline_mode = #tpu.pipeline_mode<synchronous>, transform_indices = @transform_5, window_bounds = array<i64: 128, 128>}, {pipeline_mode = #tpu.pipeline_mode<synchronous>, transform_indices = @transform_6, window_bounds = array<i64: 1, 128>}, {pipeline_mode = #tpu.pipeline_mode<synchronous>, transform_indices = @transform_7, window_bounds = array<i64: 128, 128>}, {pipeline_mode = #tpu.pipeline_mode<synchronous>, transform_indices = @transform_8, window_bounds = array<i64: 1, 128>}, {pipeline_mode = #tpu.pipeline_mode<synchronous>, transform_indices = @transform_9, window_bounds = array<i64: 128, 128>}, {pipeline_mode = #tpu.pipeline_mode<synchronous>, transform_indices = @transform_10, window_bounds = array<i64: 1, 128>}, {pipeline_mode = #tpu.pipeline_mode<synchronous>, transform_indices = @transform_11, window_bounds = array<i64: 128, 128>}, {pipeline_mode = #tpu.pipeline_mode<synchronous>, transform_indices = @transform_12, window_bounds = array<i64: 1, 128>}, {pipeline_mode = #tpu.pipeline_mode<synchronous>, transform_indices = @transform_13, window_bounds = array<i64: 128, 128>}, {pipeline_mode = #tpu.pipeline_mode<synchronous>, transform_indices = @transform_14, window_bounds = array<i64: 1, 128>}, {pipeline_mode = #tpu.pipeline_mode<synchronous>, transform_indices = @transform_15, window_bounds = array<i64: 128, 784>}, {pipeline_mode = #tpu.pipeline_mode<synchronous>, transform_indices = @transform_16, window_bounds = array<i64: 1, 784>}, {transform_indices = @transform_17, window_bounds = array<i64: 8, 784>}]} {
    %c0 = arith.constant 0 : index
    %c0_0 = arith.constant 0 : index
    %0 = vector.load %arg1[%c0, %c0_0] : memref<8x784xf32, #tpu.memory_space<vmem>>, vector<8x784xf32>
    %c0_1 = arith.constant 0 : index
    %c0_2 = arith.constant 0 : index
    %1 = vector.load %arg2[%c0_1, %c0_2] : memref<784x128xbf16, #tpu.memory_space<vmem>>, vector<784x128xbf16>
    %c0_3 = arith.constant 0 : index
    %c0_4 = arith.constant 0 : index
    %2 = vector.load %arg3[%c0_3, %c0_4] : memref<1x128xf32, #tpu.memory_space<vmem>>, vector<1x128xf32>
    %3 = arith.truncf %0 : vector<8x784xf32> to vector<8x784xbf16>
    %cst = arith.constant dense<0.000000e+00> : vector<8x128xf32>
    %4 = tpu.matmul %3, %1, %cst {dimension_numbers = #tpu.dot_dimension_numbers<[1], [0], [0], [1], [0, 0, 1, 1], [], []>} : vector<8x784xbf16>, vector<784x128xbf16>, vector<8x128xf32> -> vector<8x128xf32>
    %5 = vector.broadcast %2 : vector<1x128xf32> to vector<8x128xf32>
    %6 = arith.addf %4, %5 : vector<8x128xf32>
    %cst_5 = arith.constant 0.000000e+00 : f32
    %7 = vector.broadcast %cst_5 : f32 to vector<8x128xf32>
    %8 = arith.maximumf %6, %7 : vector<8x128xf32>
    %c0_6 = arith.constant 0 : index
    %c0_7 = arith.constant 0 : index
    %9 = vector.load %arg4[%c0_6, %c0_7] : memref<128x128xbf16, #tpu.memory_space<vmem>>, vector<128x128xbf16>
    %c0_8 = arith.constant 0 : index
    %c0_9 = arith.constant 0 : index
    %10 = vector.load %arg5[%c0_8, %c0_9] : memref<1x128xf32, #tpu.memory_space<vmem>>, vector<1x128xf32>
    %11 = arith.truncf %8 : vector<8x128xf32> to vector<8x128xbf16>
    %cst_10 = arith.constant dense<0.000000e+00> : vector<8x128xf32>
    %12 = tpu.matmul %11, %9, %cst_10 {dimension_numbers = #tpu.dot_dimension_numbers<[1], [0], [0], [1], [0, 0, 1, 1], [], []>} : vector<8x128xbf16>, vector<128x128xbf16>, vector<8x128xf32> -> vector<8x128xf32>
    %13 = vector.broadcast %10 : vector<1x128xf32> to vector<8x128xf32>
    %14 = arith.addf %12, %13 : vector<8x128xf32>
    %cst_11 = arith.constant 0.000000e+00 : f32
    %15 = vector.broadcast %cst_11 : f32 to vector<8x128xf32>
    %16 = arith.maximumf %14, %15 : vector<8x128xf32>
    %c0_12 = arith.constant 0 : index
    %c0_13 = arith.constant 0 : index
    %17 = vector.load %arg6[%c0_12, %c0_13] : memref<128x128xbf16, #tpu.memory_space<vmem>>, vector<128x128xbf16>
    %c0_14 = arith.constant 0 : index
    %c0_15 = arith.constant 0 : index
    %18 = vector.load %arg7[%c0_14, %c0_15] : memref<1x128xf32, #tpu.memory_space<vmem>>, vector<1x128xf32>
    %19 = arith.truncf %16 : vector<8x128xf32> to vector<8x128xbf16>
    %cst_16 = arith.constant dense<0.000000e+00> : vector<8x128xf32>
    %20 = tpu.matmul %19, %17, %cst_16 {dimension_numbers = #tpu.dot_dimension_numbers<[1], [0], [0], [1], [0, 0, 1, 1], [], []>} : vector<8x128xbf16>, vector<128x128xbf16>, vector<8x128xf32> -> vector<8x128xf32>
    %21 = vector.broadcast %18 : vector<1x128xf32> to vector<8x128xf32>
    %22 = arith.addf %20, %21 : vector<8x128xf32>
    %cst_17 = arith.constant 0.000000e+00 : f32
    %23 = vector.broadcast %cst_17 : f32 to vector<8x128xf32>
    %24 = arith.maximumf %22, %23 : vector<8x128xf32>
    %c0_18 = arith.constant 0 : index
    %c0_19 = arith.constant 0 : index
    %25 = vector.load %arg8[%c0_18, %c0_19] : memref<128x128xbf16, #tpu.memory_space<vmem>>, vector<128x128xbf16>
    %c0_20 = arith.constant 0 : index
    %c0_21 = arith.constant 0 : index
    %26 = vector.load %arg9[%c0_20, %c0_21] : memref<1x128xf32, #tpu.memory_space<vmem>>, vector<1x128xf32>
    %27 = arith.truncf %24 : vector<8x128xf32> to vector<8x128xbf16>
    %cst_22 = arith.constant dense<0.000000e+00> : vector<8x128xf32>
    %28 = tpu.matmul %27, %25, %cst_22 {dimension_numbers = #tpu.dot_dimension_numbers<[1], [0], [0], [1], [0, 0, 1, 1], [], []>} : vector<8x128xbf16>, vector<128x128xbf16>, vector<8x128xf32> -> vector<8x128xf32>
    %29 = vector.broadcast %26 : vector<1x128xf32> to vector<8x128xf32>
    %30 = arith.addf %28, %29 : vector<8x128xf32>
    %c0_23 = arith.constant 0 : index
    %c0_24 = arith.constant 0 : index
    %31 = vector.load %arg10[%c0_23, %c0_24] : memref<128x128xbf16, #tpu.memory_space<vmem>>, vector<128x128xbf16>
    %c0_25 = arith.constant 0 : index
    %c0_26 = arith.constant 0 : index
    %32 = vector.load %arg11[%c0_25, %c0_26] : memref<1x128xf32, #tpu.memory_space<vmem>>, vector<1x128xf32>
    %33 = arith.truncf %30 : vector<8x128xf32> to vector<8x128xbf16>
    %cst_27 = arith.constant dense<0.000000e+00> : vector<8x128xf32>
    %34 = tpu.matmul %33, %31, %cst_27 {dimension_numbers = #tpu.dot_dimension_numbers<[1], [0], [0], [1], [0, 0, 1, 1], [], []>} : vector<8x128xbf16>, vector<128x128xbf16>, vector<8x128xf32> -> vector<8x128xf32>
    %35 = vector.broadcast %32 : vector<1x128xf32> to vector<8x128xf32>
    %36 = arith.addf %34, %35 : vector<8x128xf32>
    %cst_28 = arith.constant 0.000000e+00 : f32
    %37 = vector.broadcast %cst_28 : f32 to vector<8x128xf32>
    %38 = arith.maximumf %36, %37 : vector<8x128xf32>
    %c0_29 = arith.constant 0 : index
    %c0_30 = arith.constant 0 : index
    %39 = vector.load %arg12[%c0_29, %c0_30] : memref<128x128xbf16, #tpu.memory_space<vmem>>, vector<128x128xbf16>
    %c0_31 = arith.constant 0 : index
    %c0_32 = arith.constant 0 : index
    %40 = vector.load %arg13[%c0_31, %c0_32] : memref<1x128xf32, #tpu.memory_space<vmem>>, vector<1x128xf32>
    %41 = arith.truncf %38 : vector<8x128xf32> to vector<8x128xbf16>
    %cst_33 = arith.constant dense<0.000000e+00> : vector<8x128xf32>
    %42 = tpu.matmul %41, %39, %cst_33 {dimension_numbers = #tpu.dot_dimension_numbers<[1], [0], [0], [1], [0, 0, 1, 1], [], []>} : vector<8x128xbf16>, vector<128x128xbf16>, vector<8x128xf32> -> vector<8x128xf32>
    %43 = vector.broadcast %40 : vector<1x128xf32> to vector<8x128xf32>
    %44 = arith.addf %42, %43 : vector<8x128xf32>
    %cst_34 = arith.constant 0.000000e+00 : f32
    %45 = vector.broadcast %cst_34 : f32 to vector<8x128xf32>
    %46 = arith.maximumf %44, %45 : vector<8x128xf32>
    %c0_35 = arith.constant 0 : index
    %c0_36 = arith.constant 0 : index
    %47 = vector.load %arg14[%c0_35, %c0_36] : memref<128x128xbf16, #tpu.memory_space<vmem>>, vector<128x128xbf16>
    %c0_37 = arith.constant 0 : index
    %c0_38 = arith.constant 0 : index
    %48 = vector.load %arg15[%c0_37, %c0_38] : memref<1x128xf32, #tpu.memory_space<vmem>>, vector<1x128xf32>
    %49 = arith.truncf %46 : vector<8x128xf32> to vector<8x128xbf16>
    %cst_39 = arith.constant dense<0.000000e+00> : vector<8x128xf32>
    %50 = tpu.matmul %49, %47, %cst_39 {dimension_numbers = #tpu.dot_dimension_numbers<[1], [0], [0], [1], [0, 0, 1, 1], [], []>} : vector<8x128xbf16>, vector<128x128xbf16>, vector<8x128xf32> -> vector<8x128xf32>
    %51 = vector.broadcast %48 : vector<1x128xf32> to vector<8x128xf32>
    %52 = arith.addf %50, %51 : vector<8x128xf32>
    %cst_40 = arith.constant 0.000000e+00 : f32
    %53 = vector.broadcast %cst_40 : f32 to vector<8x128xf32>
    %54 = arith.maximumf %52, %53 : vector<8x128xf32>
    %c0_41 = arith.constant 0 : index
    %c0_42 = arith.constant 0 : index
    %55 = vector.load %arg16[%c0_41, %c0_42] : memref<128x784xbf16, #tpu.memory_space<vmem>>, vector<128x784xbf16>
    %c0_43 = arith.constant 0 : index
    %c0_44 = arith.constant 0 : index
    %56 = vector.load %arg17[%c0_43, %c0_44] : memref<1x784xf32, #tpu.memory_space<vmem>>, vector<1x784xf32>
    %57 = arith.truncf %54 : vector<8x128xf32> to vector<8x128xbf16>
    %cst_45 = arith.constant dense<0.000000e+00> : vector<8x784xf32>
    %58 = tpu.matmul %57, %55, %cst_45 {dimension_numbers = #tpu.dot_dimension_numbers<[1], [0], [0], [1], [0, 0, 1, 1], [], []>} : vector<8x128xbf16>, vector<128x784xbf16>, vector<8x784xf32> -> vector<8x784xf32>
    %59 = vector.broadcast %56 : vector<1x784xf32> to vector<8x784xf32>
    %60 = arith.addf %58, %59 : vector<8x784xf32>
    %61 = math.tanh %60 : vector<8x784xf32>
    %c0_46 = arith.constant 0 : index
    %c0_47 = arith.constant 0 : index
    %62 = vector.load %arg18[%c0_46, %c0_47] : memref<8x784xf32, #tpu.memory_space<vmem>>, vector<8x784xf32>
    tpu.vector_store %arg18[%c0_46, %c0_47], %61 {strides = array<i32>} : memref<8x784xf32, #tpu.memory_space<vmem>>, vector<8x784xf32>,
    return
  }
  func.func @transform_0(%arg0: i32) -> (i32, i32) {
    %c0_i32 = arith.constant 0 : i32
    %c0_i32_0 = arith.constant 0 : i32
    return %arg0, %c0_i32 : i32, i32
  }
  func.func @transform_1(%arg0: i32) -> (i32, i32) {
    %c0_i32 = arith.constant 0 : i32
    %c0_i32_0 = arith.constant 0 : i32
    %c0_i32_1 = arith.constant 0 : i32
    return %c0_i32, %c0_i32_0 : i32, i32
  }
  func.func @transform_2(%arg0: i32) -> (i32, i32) {
    %c0_i32 = arith.constant 0 : i32
    %c0_i32_0 = arith.constant 0 : i32
    %c0_i32_1 = arith.constant 0 : i32
    return %c0_i32, %c0_i32_0 : i32, i32
  }
  func.func @transform_3(%arg0: i32) -> (i32, i32) {
    %c0_i32 = arith.constant 0 : i32
    %c0_i32_0 = arith.constant 0 : i32
    %c0_i32_1 = arith.constant 0 : i32
    return %c0_i32, %c0_i32_0 : i32, i32
  }
  func.func @transform_4(%arg0: i32) -> (i32, i32) {
    %c0_i32 = arith.constant 0 : i32
    %c0_i32_0 = arith.constant 0 : i32
    %c0_i32_1 = arith.constant 0 : i32
    return %c0_i32, %c0_i32_0 : i32, i32
  }
  func.func @transform_5(%arg0: i32) -> (i32, i32) {
    %c0_i32 = arith.constant 0 : i32
    %c0_i32_0 = arith.constant 0 : i32
    %c0_i32_1 = arith.constant 0 : i32
    return %c0_i32, %c0_i32_0 : i32, i32
  }
  func.func @transform_6(%arg0: i32) -> (i32, i32) {
    %c0_i32 = arith.constant 0 : i32
    %c0_i32_0 = arith.constant 0 : i32
    %c0_i32_1 = arith.constant 0 : i32
    return %c0_i32, %c0_i32_0 : i32, i32
  }
  func.func @transform_7(%arg0: i32) -> (i32, i32) {
    %c0_i32 = arith.constant 0 : i32
    %c0_i32_0 = arith.constant 0 : i32
    %c0_i32_1 = arith.constant 0 : i32
    return %c0_i32, %c0_i32_0 : i32, i32
  }
  func.func @transform_8(%arg0: i32) -> (i32, i32) {
    %c0_i32 = arith.constant 0 : i32
    %c0_i32_0 = arith.constant 0 : i32
    %c0_i32_1 = arith.constant 0 : i32
    return %c0_i32, %c0_i32_0 : i32, i32
  }
  func.func @transform_9(%arg0: i32) -> (i32, i32) {
    %c0_i32 = arith.constant 0 : i32
    %c0_i32_0 = arith.constant 0 : i32
    %c0_i32_1 = arith.constant 0 : i32
    return %c0_i32, %c0_i32_0 : i32, i32
  }
  func.func @transform_10(%arg0: i32) -> (i32, i32) {
    %c0_i32 = arith.constant 0 : i32
    %c0_i32_0 = arith.constant 0 : i32
    %c0_i32_1 = arith.constant 0 : i32
    return %c0_i32, %c0_i32_0 : i32, i32
  }
  func.func @transform_11(%arg0: i32) -> (i32, i32) {
    %c0_i32 = arith.constant 0 : i32
    %c0_i32_0 = arith.constant 0 : i32
    %c0_i32_1 = arith.constant 0 : i32
    return %c0_i32, %c0_i32_0 : i32, i32
  }
  func.func @transform_12(%arg0: i32) -> (i32, i32) {
    %c0_i32 = arith.constant 0 : i32
    %c0_i32_0 = arith.constant 0 : i32
    %c0_i32_1 = arith.constant 0 : i32
    return %c0_i32, %c0_i32_0 : i32, i32
  }
  func.func @transform_13(%arg0: i32) -> (i32, i32) {
    %c0_i32 = arith.constant 0 : i32
    %c0_i32_0 = arith.constant 0 : i32
    %c0_i32_1 = arith.constant 0 : i32
    return %c0_i32, %c0_i32_0 : i32, i32
  }
  func.func @transform_14(%arg0: i32) -> (i32, i32) {
    %c0_i32 = arith.constant 0 : i32
    %c0_i32_0 = arith.constant 0 : i32
    %c0_i32_1 = arith.constant 0 : i32
    return %c0_i32, %c0_i32_0 : i32, i32
  }
  func.func @transform_15(%arg0: i32) -> (i32, i32) {
    %c0_i32 = arith.constant 0 : i32
    %c0_i32_0 = arith.constant 0 : i32
    %c0_i32_1 = arith.constant 0 : i32
    return %c0_i32, %c0_i32_0 : i32, i32
  }
  func.func @transform_16(%arg0: i32) -> (i32, i32) {
    %c0_i32 = arith.constant 0 : i32
    %c0_i32_0 = arith.constant 0 : i32
    %c0_i32_1 = arith.constant 0 : i32
    return %c0_i32, %c0_i32_0 : i32, i32
  }
  func.func @transform_17(%arg0: i32) -> (i32, i32) {
    %c0_i32 = arith.constant 0 : i32
    %c0_i32_0 = arith.constant 0 : i32
    return %arg0, %c0_i32 : i32, i32
  }
}

</mosaic_0001>

<bundles_post_ra>
// kernel: autoencoder_forward.1
= control target key start
LH: loop header
LB: loop body
LE: loop exit
PB: predicated region body
PF: predicated region fallthrough
CT: control target
= control target key end

     0   :  { %vm467_vm0 = vcmask 130048   ;;  %s3110_s1 = inlined_call_operand.vmem [shape: bf16[784,128], index: 1, kind: input, shape index: {}]   ;;  %s3111_s2 = inlined_call_operand.vmem [shape: f32[1,128], index: 2, kind: input, shape index: {}]   ;;  %s3112_s0 = inlined_call_operand.vmem [shape: f32[8,784], index: 0, kind: input, shape index: {}]   ;;  %s3113_s4 = inlined_call_operand.vmem [shape: f32[1,128], index: 4, kind: input, shape index: {}]   ;;  %s3114_s3 = inlined_call_operand.vmem [shape: bf16[128,128], index: 3, kind: input, shape index: {}]   ;;  %s3115_s5 = inlined_call_operand.vmem [shape: bf16[128,128], index: 5, kind: input, shape index: {}]   ;;  %s3116_s6 = inlined_call_operand.vmem [shape: f32[1,128], index: 6, kind: input, shape index: {}]   ;;  %s3117_s7 = inlined_call_operand.vmem [shape: bf16[128,128], index: 7, kind: input, shape index: {}]   ;;  %s3118_s8 = inlined_call_operand.vmem [shape: f32[1,128], index: 8, kind: input, shape index: {}]   ;;  %s3119_s9 = inlined_call_operand.vmem [shape: bf16[128,128], index: 9, kind: input, shape index: {}]   ;;  %s3120_s10 = inlined_call_operand.vmem [shape: f32[1,128], index: 10, kind: input, shape index: {}]   ;;  %s3121_s11 = inlined_call_operand.vmem [shape: bf16[128,128], index: 11, kind: input, shape index: {}]   ;;  %s3122_s12 = inlined_call_operand.vmem [shape: f32[1,128], index: 12, kind: input, shape index: {}]   ;;  %s3123_s13 = inlined_call_operand.vmem [shape: bf16[128,128], index: 13, kind: input, shape index: {}]   ;;  %s3124_s14 = inlined_call_operand.vmem [shape: f32[1,128], index: 14, kind: input, shape index: {}]   ;;  %s3125_s15 = inlined_call_operand.vmem [shape: bf16[128,784], index: 15, kind: input, shape index: {}]   ;;  %s3126_s16 = inlined_call_operand.vmem [shape: f32[1,784], index: 16, kind: input, shape index: {}]   ;;  %s3127_s17 = inlined_call_operand.vmem [shape: f32[8,784], index: 17, kind: output, shape index: {}]  }
   0x1   :  { %3129 = sst [smem:[#allocation2_spill]] %s3110_s1  ;;  %v57_v30 = vld [vmem:[%s3112_s0] sm:$0xff]  ;;  %v58_v31 = vld [vmem:[%s3112_s0 + $0x8] sm:$0xff]  ;;  %v59_v35 = vld [vmem:[%s3112_s0 + $0x10] sm:$0xff] }
   0x2   :  { %3130 = sst [smem:[#allocation3_spill]] %s3111_s2  ;;  %v163_v36 = vpack.c.bf16 %v57_v30, %v57_v30  ;;  %v164_v37 = vpack.c.bf16 %v58_v31, %v58_v31  ;;  %v60_v40 = vld [vmem:[%s3112_s0 + $0x18] sm:$0xff]  ;;  %v165_v43 = vpack.c.bf16 %v59_v35, %v59_v35  ;;  %v63_v51 = vld [vmem:[%s3112_s0 + $0x30] sm:$0xff]  ;;  %v61_v59 = vld [vmem:[%s3112_s0 + $0x20] sm:$0xff] }
   0x3   :  { %s3131_s26 = sld [smem:[#allocation2_spill]]  ;;  %v166_v44 = vpack.c.bf16 %v60_v40, %v60_v40  ;;  %v169_v54 = vpack.c.bf16 %v63_v51, %v63_v51  ;;  %v62_v60 = vld [vmem:[%s3112_s0 + $0x28] sm:$0xff]  ;;  %v167_v61 = vpack.c.bf16 %v61_v59, %v61_v59  ;;  %v2207_v63 = vld [vmem:[%s3114_s3 + $0x38] sm:$0xff]  ;;  %v2222_v40 = vld [vmem:[%s3117_s7 + $0x30] sm:$0xff] }
   0x4   :  { %v168_v62 = vpack.c.bf16 %v62_v60, %v62_v60  ;;  %s3132_s0 = sld [smem:[#allocation3_spill]]  ;;  %v2217_v51 = vld [vmem:[%s3117_s7 + $0x8] sm:$0xff]  ;;  %v2306_v59 = vld [vmem:[%s3116_s6] ss:$0 sm:$0xff] }
   0x5   :  { %v2225_v60 = vld [vmem:[%s3119_s9 + $0x8] sm:$0xff] }
   0x9   :  { %v2158_v0 = vld [vmem:[%s3131_s26 + $0x38] sm:$0xff]  ;;  %v2157_v3 = vld [vmem:[%s3131_s26 + $0x30] sm:$0xff]  ;;  %v2156_v8 = vld [vmem:[%s3131_s26 + $0x28] sm:$0xff] }
   0xa   :  { %v2166_v1 = vld [vmem:[%s3131_s26 + $0x78] sm:$0xff]  ;;  %471 = vmatpush.bf16.msra.mxu0 %v2158_v0  ;;  %v2165_v4 = vld [vmem:[%s3131_s26 + $0x70] sm:$0xff]  ;;  %v2164_v9 = vld [vmem:[%s3131_s26 + $0x68] sm:$0xff] }
   0xb   :  { %v2174_v2 = vld [vmem:[%s3131_s26 + $0xb8] sm:$0xff]  ;;  %484 = vmatpush.bf16.msra.mxu1 %v2166_v1  ;;  %v2173_v5 = vld [vmem:[%s3131_s26 + $0xb0] sm:$0xff]  ;;  %v2172_v10 = vld [vmem:[%s3131_s26 + $0xa8] sm:$0xff] }
   0xc   :  { %497 = vmatpush.bf16.msra.mxu2 %v2174_v2  ;;  %v2182_v6 = vld [vmem:[%s3131_s26 + $0xf8] sm:$0xff]  ;;  %v2181_v7 = vld [vmem:[%s3131_s26 + $0xf0] sm:$0xff]  ;;  %v2180_v11 = vld [vmem:[%s3131_s26 + $0xe8] sm:$0xff] }
   0xd   :  { %510 = vmatpush.bf16.msra.mxu3 %v2182_v6  ;;  %v2155_v12 = vld [vmem:[%s3131_s26 + $0x20] sm:$0xff]  ;;  %v2154_v16 = vld [vmem:[%s3131_s26 + $0x18] sm:$0xff]  ;;  %v2153_v20 = vld [vmem:[%s3131_s26 + $0x10] sm:$0xff] }
   0xe   :  { %472 = vmatpush.bf16.msra.mxu0 %v2157_v3  ;;  %v2163_v13 = vld [vmem:[%s3131_s26 + $0x60] sm:$0xff]  ;;  %v2162_v17 = vld [vmem:[%s3131_s26 + $0x58] sm:$0xff]  ;;  %v2161_v21 = vld [vmem:[%s3131_s26 + $0x50] sm:$0xff] }
   0xf   :  { %485 = vmatpush.bf16.msra.mxu1 %v2165_v4  ;;  %v2171_v14 = vld [vmem:[%s3131_s26 + $0xa0] sm:$0xff]  ;;  %v2170_v18 = vld [vmem:[%s3131_s26 + $0x98] sm:$0xff]  ;;  %v2169_v22 = vld [vmem:[%s3131_s26 + $0x90] sm:$0xff] }
  0x10   :  { %498 = vmatpush.bf16.msra.mxu2 %v2173_v5  ;;  %v2179_v15 = vld [vmem:[%s3131_s26 + $0xe0] sm:$0xff]  ;;  %v2178_v19 = vld [vmem:[%s3131_s26 + $0xd8] sm:$0xff]  ;;  %v2177_v23 = vld [vmem:[%s3131_s26 + $0xd0] sm:$0xff] }
  0x11   :  { %511 = vmatpush.bf16.msra.mxu3 %v2181_v7  ;;  %v2152_v24 = vld [vmem:[%s3131_s26 + $0x8] sm:$0xff]  ;;  %v2151_v27 = vld [vmem:[%s3131_s26] sm:$0xff]  ;;  %v2190_v32 = vld [vmem:[%s3131_s26 + $0x138] sm:$0xff] }
  0x12   :  { %473 = vmatpush.bf16.msra.mxu0 %v2156_v8  ;;  %v2160_v25 = vld [vmem:[%s3131_s26 + $0x48] sm:$0xff]  ;;  %v2159_v29 = vld [vmem:[%s3131_s26 + $0x40] sm:$0xff]  ;;  %v2198_v33 = vld [vmem:[%s3131_s26 + $0x178] sm:$0xff] }
  0x13   :  { %486 = vmatpush.bf16.msra.mxu1 %v2164_v9  ;;  %v2168_v26 = vld [vmem:[%s3131_s26 + $0x88] sm:$0xff]  ;;  %v2167_v34 = vld [vmem:[%s3131_s26 + $0x80] sm:$0xff]  ;;  %v2189_v41 = vld [vmem:[%s3131_s26 + $0x130] sm:$0xff] }
  0x14   :  { %499 = vmatpush.bf16.msra.mxu2 %v2172_v10  ;;  %v2176_v28 = vld [vmem:[%s3131_s26 + $0xc8] sm:$0xff]  ;;  %v2175_v38 = vld [vmem:[%s3131_s26 + $0xc0] sm:$0xff]  ;;  %v2197_v42 = vld [vmem:[%s3131_s26 + $0x170] sm:$0xff] }
  0x15   :  { %512 = vmatpush.bf16.msra.mxu3 %v2180_v11  ;;  %v2199_v39 = vld [vmem:[%s3131_s26 + $0x180] sm:$0xff]  ;;  %v2188_v45 = vld [vmem:[%s3131_s26 + $0x128] sm:$0xff]  ;;  %v2186_v49 = vld [vmem:[%s3131_s26 + $0x118] sm:$0xff] }
  0x16   :  { %474 = vmatpush.bf16.msra.mxu0 %v2155_v12  ;;  %v2196_v46 = vld [vmem:[%s3131_s26 + $0x168] sm:$0xff]  ;;  %v2187_v47 = vld [vmem:[%s3131_s26 + $0x120] sm:$0xff]  ;;  %v2194_v50 = vld [vmem:[%s3131_s26 + $0x158] sm:$0xff] }
  0x17   :  { %487 = vmatpush.bf16.msra.mxu1 %v2163_v13  ;;  %v2195_v48 = vld [vmem:[%s3131_s26 + $0x160] sm:$0xff]  ;;  %v2185_v52 = vld [vmem:[%s3131_s26 + $0x110] sm:$0xff]  ;;  %v2184_v55 = vld [vmem:[%s3131_s26 + $0x108] sm:$0xff] }
  0x18   :  { %500 = vmatpush.bf16.msra.mxu2 %v2171_v14  ;;  %v2193_v53 = vld [vmem:[%s3131_s26 + $0x150] sm:$0xff]  ;;  %v2192_v56 = vld [vmem:[%s3131_s26 + $0x148] sm:$0xff]  ;;  %v2183_v57 = vld [vmem:[%s3131_s26 + $0x100] sm:$0xff] }
  0x19   :  { %513 = vmatpush.bf16.msra.mxu3 %v2179_v15  ;;  %v2191_v58 = vld [vmem:[%s3131_s26 + $0x140] sm:$0xff]  ;;  %v2206_v0 = vld [vmem:[%s3114_s3 + $0x30] sm:$0xff]  ;;  %v2205_v1 = vld [vmem:[%s3114_s3 + $0x28] sm:$0xff] }
  0x1a   :  { %475 = vmatpush.bf16.msra.mxu0 %v2154_v16  ;;  %v2204_v2 = vld [vmem:[%s3114_s3 + $0x20] sm:$0xff]  ;;  %v2203_v3 = vld [vmem:[%s3114_s3 + $0x18] sm:$0xff]  ;;  %v2202_v4 = vld [vmem:[%s3114_s3 + $0x10] sm:$0xff] }
  0x1b   :  { %488 = vmatpush.bf16.msra.mxu1 %v2162_v17  ;;  %v2201_v5 = vld [vmem:[%s3114_s3 + $0x8] sm:$0xff]  ;;  %v2200_v8 = vld [vmem:[%s3114_s3] sm:$0xff]  ;;  %v2215_v11 = vld [vmem:[%s3115_s5 + $0x38] sm:$0xff] }
  0x1c   :  { %501 = vmatpush.bf16.msra.mxu2 %v2170_v18  ;;  %v2214_v14 = vld [vmem:[%s3115_s5 + $0x30] sm:$0xff]  ;;  %v2304_v15 = vld [vmem:[%s3132_s0] ss:$0 sm:$0xff]  ;;  %v2213_v16 = vld [vmem:[%s3115_s5 + $0x28] sm:$0xff] }
  0x1d   :  { %514 = vmatpush.bf16.msra.mxu3 %v2178_v19 }
  0x1e   :  { %476 = vmatpush.bf16.msra.mxu0 %v2153_v20  ;;  %v2212_v20 = vld [vmem:[%s3115_s5 + $0x20] sm:$0xff] }
  0x1f   :  { %489 = vmatpush.bf16.msra.mxu1 %v2161_v21 }
  0x20   :  { %502 = vmatpush.bf16.msra.mxu2 %v2169_v22  ;;  %v2211_v22 = vld [vmem:[%s3115_s5 + $0x18] sm:$0xff] }
  0x21   :  { %515 = vmatpush.bf16.msra.mxu3 %v2177_v23 }
  0x22   :  { %477 = vmatpush.bf16.msra.mxu0 %v2152_v24 }
  0x23   :  { %490 = vmatpush.bf16.msra.mxu1 %v2160_v25  ;;  %v2210_v25 = vld [vmem:[%s3115_s5 + $0x10] sm:$0xff] }
  0x24   :  { %503 = vmatpush.bf16.msra.mxu2 %v2168_v26 }
  0x25   :  { %516 = vmatpush.bf16.msra.mxu3 %v2176_v28 }
  0x26   :  { %478 = vmatpush.bf16.msra.mxu0 %v2151_v27 }
  0x27   :  { %491 = vmatpush.bf16.msra.mxu1 %v2159_v29 }
  0x28   :  { %504 = vmatpush.bf16.msra.mxu2 %v2167_v34 }
  0x29   :  { %479 = vmatmul.bf16.vlgmr.msra.gmra.mxu0 %v163_v36  ;;  %517 = vmatpush.bf16.msra.mxu3 %v2175_v38  ;;  %v2208_v38 = vld [vmem:[%s3115_s5] sm:$0xff] }
  0x2a   :  { %523 = vmatpush.bf16.msrb.mxu0 %v2190_v32  ;;  %492 = vmatmul.bf16.vlgmr.msra.gmra.mxu1 %v164_v37  ;;  %v2209_v37 = vld [vmem:[%s3115_s5 + $0x8] sm:$0xff] }
  0x2b   :  { %536 = vmatpush.bf16.msrb.mxu1 %v2198_v33  ;;  %505 = vmatmul.bf16.vlgmr.msra.gmra.mxu2 %v165_v43  ;;  %v2219_v43 = vld [vmem:[%s3117_s7 + $0x18] sm:$0xff] }
  0x2c   :  { %556 = vmatpush.bf16.msrb.mxu2 %v2199_v39  ;;  %518 = vmatmul.bf16.vlgmr.msra.gmra.mxu3 %v166_v44  ;;  %v2223_v39 = vld [vmem:[%s3117_s7 + $0x38] sm:$0xff]  ;;  %v2218_v44 = vld [vmem:[%s3117_s7 + $0x10] sm:$0xff] }
  0x2d   :  { %632 = vmatpush.bf16.msrb.mxu3 %v2207_v63 }
  0x2e   :  { %524 = vmatpush.bf16.msrb.mxu0 %v2189_v41  ;;  %v2221_v41 = vld [vmem:[%s3117_s7 + $0x28] sm:$0xff] }
  0x2f   :  { %537 = vmatpush.bf16.msrb.mxu1 %v2197_v42  ;;  %v2220_v42 = vld [vmem:[%s3117_s7 + $0x20] sm:$0xff] }
  0x30   :  { %715 = vmatpush.bf16.msra.mxu2 %v2215_v11 }
  0x31   :  { %633 = vmatpush.bf16.msrb.mxu3 %v2206_v0 }
  0x32   :  { %525 = vmatpush.bf16.msrb.mxu0 %v2188_v45  ;;  %v2305_v45 = vld [vmem:[%s3113_s4] ss:$0 sm:$0xff] }
  0x33   :  { %538 = vmatpush.bf16.msrb.mxu1 %v2196_v46 }
  0x34   :  { %716 = vmatpush.bf16.msra.mxu2 %v2214_v14  ;;  %v2233_v14 = vld [vmem:[%s3121_s11 + $0x8] sm:$0xff] }
  0x35   :  { %634 = vmatpush.bf16.msrb.mxu3 %v2205_v1 }
  0x36   :  { %526 = vmatpush.bf16.msrb.mxu0 %v2187_v47 }
  0x37   :  { %539 = vmatpush.bf16.msrb.mxu1 %v2195_v48 }
  0x38   :  { %717 = vmatpush.bf16.msra.mxu2 %v2213_v16  ;;  %v2247_v16 = vld [vmem:[%s3123_s13 + $0x38] sm:$0xff] }
  0x39   :  { %635 = vmatpush.bf16.msrb.mxu3 %v2204_v2  ;;  %v2224_v2 = vld [vmem:[%s3119_s9] sm:$0xff] }
  0x3a   :  { %527 = vmatpush.bf16.msrb.mxu0 %v2186_v49 }
  0x3b   :  { %540 = vmatpush.bf16.msrb.mxu1 %v2194_v50  ;;  %1734 = vmatmul.msk.bf16.vlgmr.msrb.gmra.mxu2 %vm467_vm0, %v169_v54  ;;  %v2230_v54 = vld [vmem:[%s3119_s9 + $0x30] sm:$0xff] }
  0x3c   :  { %718 = vmatpush.bf16.msra.mxu2 %v2212_v20  ;;  %v2243_v20 = vld [vmem:[%s3123_s13 + $0x18] sm:$0xff] }
  0x3d   :  { %636 = vmatpush.bf16.msrb.mxu3 %v2203_v3  ;;  %v2239_v3 = vld [vmem:[%s3121_s11 + $0x38] sm:$0xff] }
  0x3e   :  { %528 = vmatpush.bf16.msrb.mxu0 %v2185_v52  ;;  %v2216_v52 = vld [vmem:[%s3117_s7] sm:$0xff] }
  0x3f   :  { %541 = vmatpush.bf16.msrb.mxu1 %v2193_v53  ;;  %v2231_v53 = vld [vmem:[%s3119_s9 + $0x38] sm:$0xff] }
  0x40   :  { %719 = vmatpush.bf16.msra.mxu2 %v2211_v22  ;;  %v2308_v22 = vld [vmem:[%s3120_s10] ss:$0 sm:$0xff] }
  0x41   :  { %637 = vmatpush.bf16.msrb.mxu3 %v2202_v4  ;;  %v2238_v4 = vld [vmem:[%s3121_s11 + $0x30] sm:$0xff] }
  0x42   :  { %529 = vmatpush.bf16.msrb.mxu0 %v2184_v55  ;;  %v2229_v55 = vld [vmem:[%s3119_s9 + $0x28] sm:$0xff] }
  0x43   :  { %542 = vmatpush.bf16.msrb.mxu1 %v2192_v56  ;;  %v2228_v56 = vld [vmem:[%s3119_s9 + $0x20] sm:$0xff] }
  0x44   :  { %720 = vmatpush.bf16.msra.mxu2 %v2210_v25 }
  0x45   :  { %638 = vmatpush.bf16.msrb.mxu3 %v2201_v5  ;;  %v2237_v5 = vld [vmem:[%s3121_s11 + $0x28] sm:$0xff] }
  0x46   :  { %530 = vmatpush.bf16.msrb.mxu0 %v2183_v57  ;;  %v2227_v57 = vld [vmem:[%s3119_s9 + $0x18] sm:$0xff] }
  0x47   :  { %543 = vmatpush.bf16.msrb.mxu1 %v2191_v58  ;;  %v2226_v58 = vld [vmem:[%s3119_s9 + $0x10] sm:$0xff] }
  0x48   :  { %721 = vmatpush.bf16.msra.mxu2 %v2209_v37 }
  0x49   :  { %531 = vmatmul.bf16.vlgmr.msrb.gmra.mxu0 %v167_v61  ;;  %639 = vmatpush.bf16.msrb.mxu3 %v2200_v8  ;;  %v2234_v8 = vld [vmem:[%s3121_s11 + $0x10] sm:$0xff] }
  0x4a   :  { %544 = vmatmul.bf16.vlgmr.msrb.gmra.mxu1 %v168_v62  ;;  %798 = vmatpush.bf16.msra.mxu0 %v2223_v39  ;;  %v2097_v39 = vld [vmem:[%s3125_s15 + $0x150] sm:$0xf] }
  0x4b   :  { %880 = vmatpush.bf16.msra.mxu1 %v2231_v53  ;;  %v2287_v53 = vld [vmem:[%s3125_s15 + $0x138] sm:$0xf0] }
  0x4c   :  { %722 = vmatpush.bf16.msra.mxu2 %v2208_v38 }
  0x4d   :  { %963 = vmatpush.bf16.msra.mxu3 %v2239_v3 }
  0x4e   :  { %799 = vmatpush.bf16.msra.mxu0 %v2222_v40  ;;  %v2293_v40 = vld [vmem:[%s3125_s15 + $0x168] sm:$0xf0] }
  0x4f   :  { %881 = vmatpush.bf16.msra.mxu1 %v2230_v54 }
  0x50   :  { %1046 = vmatpush.bf16.msrb.mxu2 %v2247_v16 }
  0x51   :  { %964 = vmatpush.bf16.msra.mxu3 %v2238_v4  ;;  %v2013_v4 = vld [vmem:[%s3125_s15 + $0xa8] sm:$0xf] }
  0x52   :  { %800 = vmatpush.bf16.msra.mxu0 %v2221_v41  ;;  %v2290_v41 = vld [vmem:[%s3125_s15 + $0x154] sm:$0xf] }
  0x53   :  { %882 = vmatpush.bf16.msra.mxu1 %v2229_v55  ;;  %v2041_v55 = vld [vmem:[%s3125_s15 + $0xe0] sm:$0xf] }
  0x55   :  { %965 = vmatpush.bf16.msra.mxu3 %v2237_v5  ;;  %v2272_v5 = vld [vmem:[%s3125_s15 + $0xc0] sm:$0xf0] }
  0x56   :  { %801 = vmatpush.bf16.msra.mxu0 %v2220_v42  ;;  %v2098_v42 = vor.u32 %v2293_v40, %v2097_v39  ;;  %v2014_v16 = vor.u32 %v2272_v5, %v2013_v4  ;;  %v1965_v39 = vld [vmem:[%s3125_s15 + $0x40] sm:$0xf]  ;;  %v2259_v40 = vld [vmem:[%s3125_s15 + $0x58] sm:$0xf0] }
  0x57   :  { %883 = vmatpush.bf16.msra.mxu1 %v2228_v56  ;;  %v2279_v56 = vld [vmem:[%s3125_s15 + $0xf8] sm:$0xf0]  ;;  %v2113_v4 = vld [vmem:[%s3125_s15 + $0x160] sm:$0xf] }
  0x58   :  { %v2042_v3 = vor.u32 %v2279_v56, %v2041_v55  ;;  %v2299_v55 = vld [vmem:[%s3125_s15 + $0x19c] sm:$0xf]  ;;  %v2143_v56 = vld [vmem:[%s3125_s15 + $0x1b4] sm:$0xf0] }
  0x5a   :  { %802 = vmatpush.bf16.msra.mxu0 %v2219_v43  ;;  %v2099_v43 = vld [vmem:[%s3125_s15 + $0x16c] sm:$0xf0] }
  0x5b   :  { %884 = vmatpush.bf16.msra.mxu1 %v2227_v57 }
  0x5e   :  { %803 = vmatpush.bf16.msra.mxu0 %v2218_v44  ;;  %v2105_v44 = vld [vmem:[%s3125_s15 + $0x158] sm:$0xf] }
  0x5f   :  { %885 = vmatpush.bf16.msra.mxu1 %v2226_v58 }
  0x62   :  { %804 = vmatpush.bf16.msra.mxu0 %v2217_v51  ;;  %v2071_v51 = vld [vmem:[%s3125_s15 + $0x134] sm:$0xf0] }
  0x63   :  { %886 = vmatpush.bf16.msra.mxu1 %v2225_v60  ;;  %v2298_v60 = vld [vmem:[%s3125_s15 + $0x194] sm:$0xf] }
  0x66   :  { %805 = vmatpush.bf16.msra.mxu0 %v2216_v52  ;;  %v2077_v52 = vld [vmem:[%s3125_s15 + $0x120] sm:$0xf] }
  0x67   :  { %887 = vmatpush.bf16.msra.mxu1 %v2224_v2  ;;  %v2078_v58 = vor.u32 %v2287_v53, %v2077_v52  ;;  %v2291_v2 = vld [vmem:[%s3125_s15 + $0x15c] sm:$0xf]  ;;  %v2141_v53 = vld [vmem:[%s3125_s15 + $0x198] sm:$0xf] }
  0xa6   :  { %v480_v6 = vpop.f32.mrf.mxu0 }
  0xa7   :  { %v493_v7 = vpop.f32.mrf.mxu1  ;;  %v481_v17 = vadd.f32 %v2304_v15, %v480_v6  ;;  %v2236_v6 = vld [vmem:[%s3121_s11 + $0x20] sm:$0xff] }
  0xa8   :  { %966 = vmatpush.bf16.msra.mxu3 %v2236_v6  ;;  %v2232_v15 = vld [vmem:[%s3121_s11] sm:$0xff]  ;;  %v2107_v6 = vld [vmem:[%s3125_s15 + $0x174] sm:$0xf0] }
  0xa9   :  { %v494_v21 = vadd.f32 %v493_v7, %v481_v17  ;;  %v2235_v7 = vld [vmem:[%s3121_s11 + $0x18] sm:$0xff]  ;;  %v2246_v17 = vld [vmem:[%s3123_s13 + $0x30] sm:$0xff] }
  0xaa   :  { %1047 = vmatpush.bf16.msrb.mxu2 %v2246_v17  ;;  %v1985_v17 = vld [vmem:[%s3125_s15 + $0x70] sm:$0xf] }
  0xac   :  { %967 = vmatpush.bf16.msra.mxu3 %v2235_v7 }
  0xae   :  { %v482_v9 = vpop.f32.mrf.mxu0  ;;  %v506_v12 = vpop.f32.mrf.mxu2 }
  0xaf   :  { %v495_v10 = vpop.f32.mrf.mxu1  ;;  %v519_v13 = vpop.f32.mrf.mxu3  ;;  %v507_v23 = vadd.f32 %v506_v12, %v494_v21  ;;  %v2307_v9 = vld [vmem:[%s3118_s8] ss:$0 sm:$0xff]  ;;  %v2242_v21 = vld [vmem:[%s3123_s13 + $0x10] sm:$0xff] }
  0xb0   :  { %968 = vmatpush.bf16.msra.mxu3 %v2234_v8 }
  0xb1   :  { %v520_v26 = vadd.f32 %v519_v13, %v507_v23 }
  0xb4   :  { %969 = vmatpush.bf16.msra.mxu3 %v2233_v14  ;;  %v2284_v14 = vld [vmem:[%s3125_s15 + $0x124] sm:$0xf] }
  0xb6   :  { %v508_v18 = vpop.f32.mrf.mxu2 }
  0xb7   :  { %v521_v19 = vpop.f32.mrf.mxu3  ;;  %v2245_v18 = vld [vmem:[%s3123_s13 + $0x28] sm:$0xff] }
  0xb8   :  { %970 = vmatpush.bf16.msra.mxu3 %v2232_v15  ;;  %1048 = vmatpush.bf16.msrb.mxu2 %v2245_v18  ;;  %v2244_v19 = vld [vmem:[%s3123_s13 + $0x20] sm:$0xff]  ;;  %v2265_v18 = vld [vmem:[%s3125_s15 + $0x88] sm:$0xf0] }
  0xb9   :  { %v2079_v15 = vld [vmem:[%s3125_s15 + $0x13c] sm:$0xf0] }
  0xbc   :  { %1049 = vmatpush.bf16.msrb.mxu2 %v2244_v19  ;;  %v2082_v19 = vor.u32 %v2284_v14, %v2079_v15 }
  0xbe   :  { %v558_v24 = vpop.f32.mrf.mxu2 }
  0xc0   :  { %1050 = vmatpush.bf16.msrb.mxu2 %v2243_v20 }
  0xc4   :  { %1051 = vmatpush.bf16.msrb.mxu2 %v2242_v21 }
  0xc6   :  { %v532_v27 = vpop.f32.mrf.mxu0  ;;  %v560_v31 = vpop.f32.mrf.mxu2 }
  0xc7   :  { %v545_v28 = vpop.f32.mrf.mxu1  ;;  %v533_v29 = vadd.f32 %v532_v27, %v520_v26  ;;  %v2300_v31 = vld [vmem:[%s3125_s15 + $0x1a0] sm:$0xf0] }
  0xc9   :  { %v546_v30 = vadd.f32 %v545_v28, %v533_v29  ;;  %v2241_v28 = vld [vmem:[%s3123_s13 + $0x8] sm:$0xff]  ;;  %v2240_v29 = vld [vmem:[%s3123_s13] sm:$0xff] }
  0xca   :  { %1052 = vmatpush.bf16.msrb.mxu2 %v2241_v28  ;;  %v2309_v28 = vld [vmem:[%s3122_s12] ss:$0 sm:$0xff] }
  0xcb   :  { %v559_v32 = vadd.f32 %v558_v24, %v546_v30  ;;  %v2125_v30 = vld [vmem:[%s3125_s15 + $0x188] sm:$0xf] }
  0xcd   :  { %v562_v33 = vmax.f32 %v559_v32, 0.0  ;;  %v2297_v32 = vld [vmem:[%s3125_s15 + $0x18c] sm:$0xf] }
  0xce   :  { %v534_v34 = vpop.f32.mrf.mxu0  ;;  %1053 = vmatpush.bf16.msrb.mxu2 %v2240_v29  ;;  %v1986_v29 = vor.u32 %v2265_v18, %v1985_v17  ;;  %v1967_v17 = vld [vmem:[%s3125_s15 + $0x5c] sm:$0xf0]  ;;  %v2085_v18 = vld [vmem:[%s3125_s15 + $0x128] sm:$0xf] }
  0xcf   :  { %v547_v35 = vpop.f32.mrf.mxu1  ;;  %v580_v36 = vpack.c.bf16 %v562_v33, %v562_v33  ;;  %v2126_v33 = vor.u32 %v2300_v31, %v2125_v30  ;;  %v2127_v34 = vld [vmem:[%s3125_s15 + $0x1a4] sm:$0xf0]  ;;  %v1957_v30 = vld [vmem:[%s3125_s15 + $0x38] sm:$0xf]  ;;  %v2258_v31 = vld [vmem:[%s3125_s15 + $0x50] sm:$0xf0] }
  0xd0   :  { %v2133_v35 = vld [vmem:[%s3125_s15 + $0x190] sm:$0xf]  ;;  %v2130_v37 = vor.u32 %v2297_v32, %v2127_v34 }
  0xd1   :  { %640 = vmatmul.bf16.vlgmr.msrb.gmra.mxu3 %v580_v36  ;;  %v2301_v36 = vld [vmem:[%s3125_s15 + $0x1a8] sm:$0xf0]  ;;  %1429 = vmatpush.bf16.msrb.mxu0 %v2126_v33 }
  0xd2   :  { %v2134_v38 = vor.u32 %v2301_v36, %v2133_v35  ;;  %1442 = vmatpush.bf16.msrb.mxu1 %v2130_v37  ;;  %v2255_v35 = vld [vmem:[%s3125_s15 + $0x3c] sm:$0xf]  ;;  %v2270_v36 = vld [vmem:[%s3125_s15 + $0xb4] sm:$0xf]  ;;  %v2023_v37 = vld [vmem:[%s3125_s15 + $0xcc] sm:$0xf0] }
  0xd4   :  { %1455 = vmatpush.bf16.msrb.mxu3 %v2134_v38  ;;  %v1959_v38 = vld [vmem:[%s3125_s15 + $0x54] sm:$0xf0] }
  0xd5   :  { %1430 = vmatpush.bf16.msrb.mxu0 %v2098_v42  ;;  %v1929_v42 = vld [vmem:[%s3125_s15] sm:$0xf] }
 0x154   :  { %v641_v46 = vpop.f32.mrf.mxu3 }
 0x155   :  { %v642_v47 = vadd.f32 %v2305_v45, %v641_v46  ;;  %v2294_v45 = vld [vmem:[%s3125_s15 + $0x170] sm:$0xf0]  ;;  %v2102_v46 = vor.u32 %v2290_v41, %v2099_v43  ;;  %v1958_v41 = vor.u32 %v2258_v31, %v1957_v30  ;;  %v2251_v43 = vld [vmem:[%s3125_s15 + $0x18] sm:$0xf0]  ;;  %v2057_v30 = vld [vmem:[%s3125_s15 + $0xf0] sm:$0xf] }
 0x157   :  { %v645_v48 = vmax.f32 %v642_v47, 0.0  ;;  %v2106_v47 = vor.u32 %v2294_v45, %v2105_v44  ;;  %1443 = vmatpush.bf16.msrb.mxu1 %v2102_v46  ;;  %v2248_v44 = vld [vmem:[%s3125_s15 + $0x4] sm:$0xf]  ;;  %v2026_v45 = vor.u32 %v2270_v36, %v2023_v37  ;;  %v2065_v37 = vld [vmem:[%s3125_s15 + $0xf8] sm:$0xf] }
 0x159   :  { %v663_v49 = vpack.c.bf16 %v645_v48, %v645_v48  ;;  %v2069_v48 = vld [vmem:[%s3125_s15 + $0x118] sm:$0xf]  ;;  %1456 = vmatpush.bf16.msrb.mxu3 %v2106_v47  ;;  %v1962_v47 = vor.u32 %v2255_v35, %v1959_v38  ;;  %v2282_v38 = vld [vmem:[%s3125_s15 + $0x110] sm:$0xf0] }
 0x15b   :  { %723 = vmatmul.bf16.vlgmr.msra.gmra.mxu2 %v663_v49  ;;  %v2286_v49 = vld [vmem:[%s3125_s15 + $0x130] sm:$0xf0] }
 0x15c   :  { %v643_v50 = vpop.f32.mrf.mxu3  ;;  %v2070_v54 = vor.u32 %v2286_v49, %v2069_v48  ;;  %v1966_v48 = vor.u32 %v2259_v40, %v1965_v39  ;;  %v1931_v49 = vld [vmem:[%s3125_s15 + $0x1c] sm:$0xf0]  ;;  %v2066_v39 = vor.u32 %v2282_v38, %v2065_v37  ;;  %v2029_v40 = vld [vmem:[%s3125_s15 + $0xb8] sm:$0xf] }
 0x15d   :  { %v2283_v50 = vld [vmem:[%s3125_s15 + $0x11c] sm:$0xf]  ;;  %1457 = vmatpush.bf16.msrb.mxu3 %v2078_v58 }
 0x15e   :  { %v2074_v57 = vor.u32 %v2283_v50, %v2071_v51  ;;  %1431 = vmatpush.bf16.msrb.mxu0 %v2070_v54  ;;  %v1937_v50 = vld [vmem:[%s3125_s15 + $0x8] sm:$0xf]  ;;  %v2252_v51 = vld [vmem:[%s3125_s15 + $0x20] sm:$0xf0]  ;;  %v2302_v54 = vld [vmem:[%s3125_s15 + $0x1b0] sm:$0xf0] }
 0x15f   :  { %v2303_v58 = vld [vmem:[%s3125_s15 + $0x1b8] sm:$0xf0] }
 0x160   :  { %1444 = vmatpush.bf16.msrb.mxu1 %v2074_v57  ;;  %v2149_v57 = vld [vmem:[%s3125_s15 + $0x1a0] sm:$0xf] }
 0x161   :  { %v2150_v5 = vor.u32 %v2303_v58, %v2149_v57  ;;  %v1973_v58 = vld [vmem:[%s3125_s15 + $0x48] sm:$0xf] }
 0x162   :  { %1432 = vmatpush.bf16.msrb.mxu0 %v2042_v3  ;;  %v2146_v3 = vor.u32 %v2299_v55, %v2143_v56  ;;  %v2268_v55 = vld [vmem:[%s3125_s15 + $0xa0] sm:$0xf0] }
 0x166   :  { %1433 = vmatpush.bf16.msrb.mxu0 %v2014_v16  ;;  %v2256_v16 = vld [vmem:[%s3125_s15 + $0x44] sm:$0xf] }
 0x16a   :  { %1434 = vmatpush.bf16.msrb.mxu0 %v1986_v29  ;;  %v1939_v29 = vld [vmem:[%s3125_s15 + $0x24] sm:$0xf0] }
 0x16e   :  { %1435 = vmatpush.bf16.msrb.mxu0 %v1958_v41  ;;  %v2274_v41 = vld [vmem:[%s3125_s15 + $0xd0] sm:$0xf0] }
 0x1de   :  { %v724_v61 = vpop.f32.mrf.mxu2 }
 0x1df   :  { %v725_v62 = vadd.f32 %v2306_v59, %v724_v61  ;;  %v2276_v59 = vld [vmem:[%s3125_s15 + $0xe4] sm:$0xf]  ;;  %v2135_v61 = vld [vmem:[%s3125_s15 + $0x1ac] sm:$0xf0] }
 0x1e1   :  { %v728_v63 = vmax.f32 %v725_v62, 0.0  ;;  %v2043_v62 = vld [vmem:[%s3125_s15 + $0xfc] sm:$0xf0] }
 0x1e2   :  { %v2046_v7 = vor.u32 %v2276_v59, %v2043_v62  ;;  %v1995_v62 = vld [vmem:[%s3125_s15 + $0x94] sm:$0xf0] }
 0x1e3   :  { %v746_v0 = vpack.c.bf16 %v728_v63, %v728_v63  ;;  %v2049_v63 = vld [vmem:[%s3125_s15 + $0xe8] sm:$0xf] }
 0x1e4   :  { %1445 = vmatpush.bf16.msrb.mxu1 %v2046_v7  ;;  %v2295_v7 = vld [vmem:[%s3125_s15 + $0x178] sm:$0xf0] }
 0x1e5   :  { %806 = vmatmul.bf16.vlgmr.msra.gmra.mxu0 %v746_v0  ;;  %v2280_v0 = vld [vmem:[%s3125_s15 + $0x100] sm:$0xf0] }
 0x1e6   :  { %v726_v1 = vpop.f32.mrf.mxu2  ;;  %v2050_v8 = vor.u32 %v2280_v0, %v2049_v63  ;;  %v1934_v63 = vor.u32 %v2248_v44, %v1931_v49  ;;  %v1938_v0 = vor.u32 %v2252_v51, %v1937_v50  ;;  %v2031_v44 = vld [vmem:[%s3125_s15 + $0xd4] sm:$0xf0]  ;;  %v2001_v49 = vld [vmem:[%s3125_s15 + $0x80] sm:$0xf]  ;;  %v2267_v50 = vld [vmem:[%s3125_s15 + $0x98] sm:$0xf0] }
 0x1e7   :  { %v2138_v1 = vor.u32 %v2298_v60, %v2135_v61  ;;  %v1930_v60 = vor.u32 %v2251_v43, %v1929_v42  ;;  %v2263_v61 = vld [vmem:[%s3125_s15 + $0x7c] sm:$0xf]  ;;  %v2030_v43 = vor.u32 %v2274_v41, %v2029_v40  ;;  %v2264_v51 = vld [vmem:[%s3125_s15 + $0x84] sm:$0xf] }
 0x1e8   :  { %1458 = vmatpush.bf16.msrb.mxu3 %v2050_v8  ;;  %v2292_v8 = vld [vmem:[%s3125_s15 + $0x164] sm:$0xf]  ;;  %v2271_v42 = vld [vmem:[%s3125_s15 + $0xbc] sm:$0xf] }
 0x1e9   :  { %1468 = vmatpush.bf16.msra.mxu2 %v2138_v1  ;;  %1436 = vmatpush.bf16.msrb.mxu0 %v1930_v60  ;;  %v2257_v60 = vld [vmem:[%s3125_s15 + $0x4c] sm:$0xf] }
 0x262   :  { %v807_v10 = vpop.f32.mrf.mxu0 }
 0x263   :  { %v808_v11 = vadd.f32 %v2307_v9, %v807_v10  ;;  %v2269_v9 = vld [vmem:[%s3125_s15 + $0xac] sm:$0xf]  ;;  %v2015_v10 = vld [vmem:[%s3125_s15 + $0xc4] sm:$0xf0] }
 0x264   :  { %v2018_v20 = vor.u32 %v2269_v9, %v2015_v10  ;;  %v2115_v9 = vld [vmem:[%s3125_s15 + $0x17c] sm:$0xf0]  ;;  %v2121_v10 = vld [vmem:[%s3125_s15 + $0x168] sm:$0xf] }
 0x265   :  { %v828_v12 = vpack.c.bf16 %v808_v11, %v808_v11  ;;  %v2021_v11 = vld [vmem:[%s3125_s15 + $0xb0] sm:$0xf]  ;;  %v2118_v14 = vor.u32 %v2292_v8, %v2115_v9  ;;  %v2254_v8 = vld [vmem:[%s3125_s15 + $0x30] sm:$0xf0] }
 0x266   :  { %1446 = vmatpush.bf16.msrb.mxu1 %v2018_v20  ;;  %v2288_v20 = vld [vmem:[%s3125_s15 + $0x140] sm:$0xf0] }
 0x267   :  { %888 = vmatmul.bf16.vlgmr.msra.gmra.mxu1 %v828_v12  ;;  %v2110_v12 = vor.u32 %v2291_v2, %v2107_v6  ;;  %v2142_v2 = vor.u32 %v2302_v54, %v2141_v53  ;;  %v1998_v6 = vor.u32 %v2263_v61, %v1995_v62  ;;  %v2003_v53 = vld [vmem:[%s3125_s15 + $0x9c] sm:$0xf0]  ;;  %v2009_v54 = vld [vmem:[%s3125_s15 + $0x88] sm:$0xf]  ;;  %v1981_v62 = vld [vmem:[%s3125_s15 + $0x50] sm:$0xf] }
 0x268   :  { %v2006_v56 = vor.u32 %v2264_v51, %v2003_v53  ;;  %v2010_v57 = vor.u32 %v2268_v55, %v2009_v54  ;;  %v1975_v61 = vld [vmem:[%s3125_s15 + $0x64] sm:$0xf0] }
 0x269   :  { %1469 = vmatpush.bf16.msra.mxu2 %v2110_v12  ;;  %1481 = vmatpush.bf16.msra.mxu0 %v2142_v2 }
 0x26a   :  { %v809_v13 = vpop.f32.mrf.mxu0 }
 0x26b   :  { %v2273_v13 = vld [vmem:[%s3125_s15 + $0xc8] sm:$0xf0] }
 0x26c   :  { %v2022_v21 = vor.u32 %v2273_v13, %v2021_v11  ;;  %v2296_v11 = vld [vmem:[%s3125_s15 + $0x180] sm:$0xf0]  ;;  %v2114_v13 = vor.u32 %v2295_v7, %v2113_v4  ;;  %v2253_v4 = vld [vmem:[%s3125_s15 + $0x28] sm:$0xf0]  ;;  %v1953_v7 = vld [vmem:[%s3125_s15 + $0x18] sm:$0xf] }
 0x26d   :  { %1470 = vmatpush.bf16.msra.mxu2 %v2082_v19  ;;  %v2122_v15 = vor.u32 %v2296_v11, %v2121_v10  ;;  %v1970_v19 = vor.u32 %v2256_v16, %v1967_v17  ;;  %v1954_v11 = vor.u32 %v2254_v8, %v1953_v7 }
 0x26e   :  { %1459 = vmatpush.bf16.msrb.mxu3 %v2022_v21  ;;  %1482 = vmatpush.bf16.msra.mxu0 %v2114_v13  ;;  %v2285_v21 = vld [vmem:[%s3125_s15 + $0x12c] sm:$0xf] }
 0x2e4   :  { %v889_v23 = vpop.f32.mrf.mxu1 }
 0x2e5   :  { %v890_v24 = vadd.f32 %v2308_v22, %v889_v23  ;;  %v2262_v22 = vld [vmem:[%s3125_s15 + $0x74] sm:$0xf]  ;;  %v2277_v23 = vld [vmem:[%s3125_s15 + $0xec] sm:$0xf] }
 0x2e7   :  { %v893_v25 = vmax.f32 %v890_v24, 0.0  ;;  %v2051_v24 = vld [vmem:[%s3125_s15 + $0x104] sm:$0xf0] }
 0x2e8   :  { %v2054_v32 = vor.u32 %v2277_v23, %v2051_v24  ;;  %v2086_v23 = vor.u32 %v2288_v20, %v2085_v18  ;;  %v1124_v18 = vld [vmem:[%s3126_s16] sm:$0x7f] }
 0x2e9   :  { %v911_v26 = vpack.c.bf16 %v893_v25, %v893_v25  ;;  %v1987_v25 = vld [vmem:[%s3125_s15 + $0x8c] sm:$0xf0]  ;;  %v1128_v20 = vperm.slane %v1124_v18, 1 }
 0x2ea   :  { %v1990_v33 = vor.u32 %v2262_v22, %v1987_v25  ;;  %1471 = vmatpush.bf16.msra.mxu2 %v2054_v32  ;;  %v2087_v22 = vld [vmem:[%s3125_s15 + $0x144] sm:$0xf0]  ;;  %v2093_v25 = vld [vmem:[%s3125_s15 + $0x130] sm:$0xf]  ;;  %1483 = vmatpush.bf16.msra.mxu0 %v2086_v23  ;;  %v2281_v32 = vld [vmem:[%s3125_s15 + $0x108] sm:$0xf0] }
 0x2eb   :  { %971 = vmatmul.bf16.vlgmr.msra.gmra.mxu3 %v911_v26  ;;  %v1993_v26 = vld [vmem:[%s3125_s15 + $0x78] sm:$0xf]  ;;  %v2090_v24 = vor.u32 %v2285_v21, %v2087_v22  ;;  %v2058_v35 = vor.u32 %v2281_v32, %v2057_v30 }
 0x2ec   :  { %v891_v27 = vpop.f32.mrf.mxu1  ;;  %1447 = vmatpush.bf16.msrb.mxu1 %v1990_v33  ;;  %v2278_v33 = vld [vmem:[%s3125_s15 + $0xf4] sm:$0xf] }
 0x2ed   :  { %v2266_v27 = vld [vmem:[%s3125_s15 + $0x90] sm:$0xf0] }
 0x2ee   :  { %v1994_v34 = vor.u32 %v2266_v27, %v1993_v26  ;;  %1472 = vmatpush.bf16.msra.mxu2 %v2026_v45  ;;  %v2289_v26 = vld [vmem:[%s3125_s15 + $0x148] sm:$0xf0]  ;;  %1484 = vmatpush.bf16.msra.mxu0 %v2058_v35  ;;  %v2037_v45 = vld [vmem:[%s3125_s15 + $0xc0] sm:$0xf]  ;;  %v1131_v35 = vperm.slane %v1124_v18, 4 }
 0x2ef   :  { %v2094_v27 = vor.u32 %v2289_v26, %v2093_v25  ;;  %v1129_v25 = vperm.slane %v1124_v18, 2  ;;  %v1130_v26 = vperm.slane %v1124_v18, 3 }
 0x2f0   :  { %1460 = vmatpush.bf16.msrb.mxu3 %v1994_v34  ;;  %1448 = vmatpush.bf16.msrb.mxu1 %v1962_v47  ;;  %v2059_v34 = vld [vmem:[%s3125_s15 + $0x10c] sm:$0xf0]  ;;  %v2034_v47 = vor.u32 %v2271_v42, %v2031_v44 }
 0x2f1   :  { %v2062_v36 = vor.u32 %v2278_v33, %v2059_v34 }
 0x2f2   :  { %1473 = vmatpush.bf16.msra.mxu2 %v1998_v6  ;;  %1485 = vmatpush.bf16.msra.mxu0 %v2030_v43  ;;  %v1947_v6 = vld [vmem:[%s3125_s15 + $0x2c] sm:$0xf0] }
 0x2f4   :  { %1461 = vmatpush.bf16.msrb.mxu3 %v1966_v48  ;;  %1449 = vmatpush.bf16.msrb.mxu1 %v1934_v63  ;;  %v2261_v63 = vld [vmem:[%s3125_s15 + $0x68] sm:$0xf0] }
 0x2f5   :  { %v1982_v2 = vor.u32 %v2261_v63, %v1981_v62 }
 0x2f6   :  { %1474 = vmatpush.bf16.msra.mxu2 %v1970_v19  ;;  %v1127_v19 = vperm.slane %v1124_v18, 0 }
 0x2f8   :  { %1462 = vmatpush.bf16.msrb.mxu3 %v1938_v0  ;;  %1494 = vmatpush.bf16.msra.mxu1 %v2146_v3  ;;  %v1945_v3 = vld [vmem:[%s3125_s15 + $0x10] sm:$0xf] }
 0x2f9   :  { %v1946_v9 = vor.u32 %v2253_v4, %v1945_v3 }
 0x2fc   :  { %1507 = vmatpush.bf16.msra.mxu3 %v2150_v5  ;;  %1495 = vmatpush.bf16.msra.mxu1 %v2118_v14  ;;  %v2250_v5 = vld [vmem:[%s3125_s15 + $0x14] sm:$0xf] }
 0x2fd   :  { %v1950_v10 = vor.u32 %v2250_v5, %v1947_v6 }
 0x300   :  { %1508 = vmatpush.bf16.msra.mxu3 %v2122_v15  ;;  %1496 = vmatpush.bf16.msra.mxu1 %v2090_v24 }
 0x304   :  { %1509 = vmatpush.bf16.msra.mxu3 %v2094_v27  ;;  %1497 = vmatpush.bf16.msra.mxu1 %v2062_v36  ;;  %v1132_v36 = vperm.slane %v1124_v18, 5 }
 0x308   :  { %1510 = vmatpush.bf16.msra.mxu3 %v2066_v39  ;;  %1498 = vmatpush.bf16.msra.mxu1 %v2034_v47 }
 0x30c   :  { %1499 = vmatpush.bf16.msra.mxu1 %v2006_v56 }
 0x36e   :  { %v972_v46 = vpop.f32.mrf.mxu3 }
 0x36f   :  { %v973_v52 = vadd.f32 %v2309_v28, %v972_v46  ;;  %v2249_v28 = vld [vmem:[%s3125_s15 + $0xc] sm:$0xf]  ;;  %v2275_v46 = vld [vmem:[%s3125_s15 + $0xd8] sm:$0xf0] }
 0x370   :  { %v1942_v31 = vor.u32 %v2249_v28, %v1939_v29  ;;  %v2038_v48 = vor.u32 %v2275_v46, %v2037_v45  ;;  %v1133_v45 = vperm.slane %v1124_v18, 6 }
 0x371   :  { %v976_v59 = vmax.f32 %v973_v52, 0.0  ;;  %v2002_v52 = vor.u32 %v2267_v50, %v2001_v49 }
 0x372   :  { %1475 = vmatpush.bf16.msra.mxu2 %v1942_v31  ;;  %1511 = vmatpush.bf16.msra.mxu3 %v2038_v48 }
 0x373   :  { %v994_v1 = vpack.c.bf16 %v976_v59, %v976_v59  ;;  %v2260_v59 = vld [vmem:[%s3125_s15 + $0x60] sm:$0xf0]  ;;  %1486 = vmatpush.bf16.msra.mxu0 %v2002_v52 }
 0x374   :  { %v1974_v0 = vor.u32 %v2260_v59, %v1973_v58 }
 0x375   :  { %1054 = vmatmul.bf16.vlgmr.msrb.gmra.mxu2 %v994_v1  ;;  %v1978_v1 = vor.u32 %v2257_v60, %v1975_v61 }
 0x376   :  { %v974_v12 = vpop.f32.mrf.mxu3  ;;  %1512 = vmatpush.bf16.msra.mxu3 %v2010_v57 }
 0x377   :  { %1487 = vmatpush.bf16.msra.mxu0 %v1974_v0  ;;  %1500 = vmatpush.bf16.msra.mxu1 %v1978_v1  ;;  %v2310_v12 = vld [vmem:[%s3124_s14] ss:$0 sm:$0xff] }
 0x37a   :  { %1513 = vmatpush.bf16.msra.mxu3 %v1982_v2 }
 0x37b   :  { %1488 = vmatpush.bf16.msra.mxu0 %v1946_v9  ;;  %1501 = vmatpush.bf16.msra.mxu1 %v1950_v10 }
 0x37e   :  { %1514 = vmatpush.bf16.msra.mxu3 %v1954_v11 }
 0x3f8   :  { %v1055_v13 = vpop.f32.mrf.mxu2 }
 0x3f9   :  { %v1056_v14 = vadd.f32 %v2310_v12, %v1055_v13 }
 0x3fb   :  { %v1059_v15 = vmax.f32 %v1056_v14, 0.0 }
 0x3fd   :  { %v1125_v16 = vpack.c.bf16 %v1059_v15, %v1059_v15 }
 0x3ff   :  { %1437 = vmatmul.bf16.vlgmr.msrb.gmra.mxu0 %v1125_v16  ;;  %1450 = vmatmul.bf16.vlgmr.msrb.gmra.mxu1 %v1125_v16 }
 0x400   :  { %1463 = vmatmul.bf16.vlgmr.msrb.gmra.mxu3 %v1125_v16  ;;  %1476 = vmatmul.bf16.vlgmr.msra.gmra.mxu2 %v1125_v16  ;;  %v1057_v17 = vpop.f32.mrf.mxu2 }
 0x40f   :  { %1489 = vmatmul.bf16.vlgmr.msra.gmra.mxu0 %v1125_v16  ;;  %1502 = vmatmul.bf16.vlgmr.msra.gmra.mxu1 %v1125_v16 }
 0x410   :  { %1515 = vmatmul.bf16.vlgmr.msra.gmra.mxu3 %v1125_v16 }
 0x47c   :  { %v1438_v21 = vpop.f32.mrf.mxu0  ;;  %v1451_v22 = vpop.f32.mrf.mxu1 }
 0x47d   :  { %v1439_v23 = vadd.f32 %v1438_v21, %v1127_v19  ;;  %v1452_v24 = vadd.f32 %v1451_v22, %v1128_v20 }
 0x47f   :  { %2311 = vtanh.f32 %v1439_v23 }
 0x480   :  { %2313 = vtanh.f32 %v1452_v24 }
 0x483   :  { %v1464_v27 = vpop.f32.mrf.mxu3  ;;  %v1477_v28 = vpop.f32.mrf.mxu2 }
 0x484   :  { %v1465_v29 = vadd.f32 %v1464_v27, %v1129_v25  ;;  %v1478_v30 = vadd.f32 %v1477_v28, %v1130_v26  ;;  %v1440_v31 = vpop.f32.mrf.mxu0  ;;  %v1453_v32 = vpop.f32.mrf.mxu1 }
 0x485   :  { %v2312_v33 = vpop.eup %2311 }
 0x486   :  { %v2314_v34 = vpop.eup %2313  ;;  %1527 = vst [vmem:[%s3127_s17] sm:$0xff] %v2312_v33  ;;  %2315 = vtanh.f32 %v1465_v29 }
 0x487   :  { %1528 = vst [vmem:[%s3127_s17 + $0x8] sm:$0xff] %v2314_v34  ;;  %2317 = vtanh.f32 %v1478_v30 }
 0x48b   :  { %v1466_v37 = vpop.f32.mrf.mxu3  ;;  %v1479_v38 = vpop.f32.mrf.mxu2 }
 0x48c   :  { %v2316_v39 = vpop.eup %2315  ;;  %v1490_v40 = vpop.f32.mrf.mxu0 }
 0x48d   :  { %v1503_v41 = vpop.f32.mrf.mxu1  ;;  %v2318_v42 = vpop.eup %2317  ;;  %1529 = vst [vmem:[%s3127_s17 + $0x10] sm:$0xff] %v2316_v39  ;;  %v1491_v43 = vadd.f32 %v1490_v40, %v1131_v35 }
 0x48e   :  { %v1504_v44 = vadd.f32 %v1503_v41, %v1132_v36  ;;  %1530 = vst [vmem:[%s3127_s17 + $0x18] sm:$0xff] %v2318_v42 }
 0x48f   :  { %2319 = vtanh.f32 %v1491_v43 }
 0x490   :  { %2321 = vtanh.f32 %v1504_v44 }
 0x493   :  { %v1516_v46 = vpop.f32.mrf.mxu3 }
 0x494   :  { %v1517_v47 = vadd.f32 %v1516_v46, %v1133_v45  ;;  %v1492_v48 = vpop.f32.mrf.mxu0 }
 0x495   :  { %v1505_v49 = vpop.f32.mrf.mxu1  ;;  %v2320_v50 = vpop.eup %2319 }
 0x496   :  { %v2322_v51 = vpop.eup %2321  ;;  %1531 = vst [vmem:[%s3127_s17 + $0x20] sm:$0xff] %v2320_v50  ;;  %2323 = vtanh.f32 %v1517_v47 }
 0x497   :  { %1532 = vst [vmem:[%s3127_s17 + $0x28] sm:$0xff] %v2322_v51 }
 0x49b   :  { %v1518_v52 = vpop.f32.mrf.mxu3 }
 0x49c   :  { %v2324_v53 = vpop.eup %2323 }
 0x49d   :  { %1533 = vst.msk [vmem:[%s3127_s17 + $0x30] sm:$0xff] %vm467_vm0, %v2324_v53 }

</bundles_post_ra>
